<compile_context>
chip_gen: v7x
topology: tpu7x:2x2x1
jax: 0.10.0
libtpu: 0.0.40
codegen_flags: <defaults>
</compile_context>

<pallas_src>
import functools

import jax
import jax.numpy as jnp
from jax.experimental import pallas as pl
from jax.experimental.pallas import tpu as pltpu


def _adaptive_encoder_kernel(g_ref, bnd_ref, w_ref, b_ref, o_ref):
    # g_ref:   (1, s, TL)     frames t*TL .. t*TL+TL-1   (frame j = x_pad[j*s:(j+1)*s])
    # bnd_ref: (1, 1, s, 1)   boundary frame (t+1)*TL for this L tile
    # w_ref:   (2, TF, s)     [w_lo, w_hi]  split filter halves
    # b_ref:   (TF, 1)
    # o_ref:   (1, TF, TL)
    tl = g_ref.shape[2]

    lo = g_ref[0]                                    # (s, TL)
    bcol = bnd_ref[0, 0]                             # (s, 1)

    # hi frames = lo shifted left by one frame (XLU lane roll, free slot relative to
    # VPU/MXU); patch only the last lane column with the boundary frame.
    rolled = pltpu.roll(lo, shift=tl - 1, axis=1)    # rolled[:, j] = lo[:, (j+1) % TL]
    lane = jax.lax.broadcasted_iota(jnp.int32, (1, tl), 1)
    hi = jnp.where(lane == tl - 1, bcol, rolled)     # (s, TL)

    # Two small-contraction MXU matmuls, f32 accumulate (no (K,TL) concat relayout).
    acc = jnp.dot(w_ref[0], lo, preferred_element_type=jnp.float32)
    acc = acc + jnp.dot(w_ref[1], hi, preferred_element_type=jnp.float32)
    acc = acc + b_ref[...]                           # (TF,1) -> (TF,TL)
    o_ref[0] = jnp.maximum(acc, 0.0).astype(o_ref.dtype)   # ReLU (+ optional bf16 cast)


@functools.partial(jax.jit,
                   static_argnames=("freq_res", "sample_res", "out_dtype"))
def adaptive_encoder_1d(signal, weight, bias, *, freq_res, sample_res,
                        out_dtype=jnp.float32):
    """Forward pass of AdaptiveEncoder1D.

    signal: [B, 1, N] float32
    weight: [freq_res, 1, sample_res] float32   (PyTorch Conv1d weight layout)
    bias:   [freq_res] float32
    returns [B, freq_res, L_out],  L_out = N // (sample_res//2) + 1
    """
    # TODO(synk): odd sample_res (stride != kernel//2 exactly) needs a third partial
    # frame term; only even sample_res is handled here.
    assert sample_res % 2 == 0, "kernel assumes even sample_res"
    B, cin, N = signal.shape
    assert cin == 1
    F, K = freq_res, sample_res
    s = K // 2                                  # stride == padding == K//2
    L_out = (N + 2 * s - K) // s + 1
    n_frames = L_out + 1

    # ---- tiling --------------------------------------------------------------
    # Freq tile (feeds both v7x TensorCores for large F, bounds the output buffer).
    if F >= 256 and F % 128 == 0:
        TF = 256 if F % 256 == 0 else 128
    else:
        TF = F
    NF = F // TF

    # L tile from a conservative VMEM budget: 2x(TF*TL*4) out + 2x(s*TL*4) frames
    # ~<= 8 MiB, so it fits the default scoped VMEM on v5e/v6e/v7x.  Multiple of
    # 128 lanes (lane-dense stores), capped at 4096.
    VMEM_BUDGET = 8 * 1024 * 1024
    tl_cap = max(128, (VMEM_BUDGET // (8 * (TF + s))) // 128 * 128)
    TL = min(4096, tl_cap, ((L_out + 127) // 128) * 128)
    NLT = pl.cdiv(L_out, TL)

    # ---- glue (plain JAX layout plumbing): pad + frame the signal ONCE -------
    # TODO(synk): for very small F this framing pass adds 10-30% HBM traffic; fuse
    # it into the upstream producer if that ever matters.
    x = signal[:, 0, :]                                        # [B, N]
    x_pad = jnp.pad(x, ((0, 0), (s, s)))                       # [B, N + 2s]
    frames = x_pad[:, : n_frames * s].reshape(B, n_frames, s)  # [B, n_frames, s]
    frames_t = jnp.transpose(frames, (0, 2, 1))                # [B, s, n_frames]

    # Per-L-tile boundary frame ((t+1)*TL), delivered to the kernel per grid step
    # as a tiny (s, 1) sublane column (zero in-kernel selection cost).  Padded
    # columns only ever feed output columns >= L_out, which are masked on store.
    nb = L_out // TL
    bnd = frames[:, TL::TL, :]                                 # [B, nb, s]
    if nb < NLT:
        bnd = jnp.pad(bnd, ((0, 0), (0, NLT - nb), (0, 0)))    # [B, NLT, s]
    bnd = bnd.reshape(B, NLT, s, 1)                            # [B, NLT, s, 1]

    w = weight[:, 0, :]                                        # [F, K]
    w2 = jnp.stack([w[:, :s], w[:, s:]], axis=0)               # [2, F, s] split halves
    b2 = bias.reshape(F, 1)                                    # [F, 1]

    # ---- hot path: Pallas kernel over (batch, freq tiles, L tiles) ------------
    out = pl.pallas_call(
        _adaptive_encoder_kernel,
        out_shape=jax.ShapeDtypeStruct((B, F, L_out), out_dtype),
        grid_spec=pltpu.PrefetchScalarGridSpec(
            num_scalar_prefetch=0,
            grid=(B, NF, NLT),
            in_specs=[
                pl.BlockSpec((1, s, TL), lambda b, f, t: (b, 0, t)),     # frames
                pl.BlockSpec((1, 1, s, 1), lambda b, f, t: (b, t, 0, 0)),  # boundary
                pl.BlockSpec((2, TF, s), lambda b, f, t: (0, f, 0)),     # split weight
                pl.BlockSpec((TF, 1), lambda b, f, t: (f, 0)),           # bias
            ],
            out_specs=pl.BlockSpec((1, TF, TL), lambda b, f, t: (b, f, t)),
        ),
        compiler_params=pltpu.CompilerParams(
            dimension_semantics=("parallel", "parallel", "parallel")),
    )(frames_t, bnd, w2, b2)
    return out


def _reference(signal, weight, bias, sample_res):
    """Pure-JAX reference matching F.relu(nn.Conv1d(...)(signal))."""
    s = sample_res // 2
    out = jax.lax.conv_general_dilated(
        signal, weight,
        window_strides=(s,),
        padding=[(s, s)],
        dimension_numbers=("NCH", "OIH", "NCH"),
    )
    return jnp.maximum(out + bias[None, :, None], 0.0)


if __name__ == "__main__":
    # Small shapes consistent with the module: [batch, 1, n_samples]
    B, freq_res, sample_res, n_samples = 2, 32, 8, 64

    key = jax.random.PRNGKey(0)
    k_sig, k_w, k_b = jax.random.split(key, 3)

    signal = jax.random.normal(k_sig, (B, 1, n_samples), dtype=jnp.float32)

    # Deterministic Conv1d-style init: U(-sqrt(k), sqrt(k)), k = 1/(in_ch * K)
    bound = 1.0 / (1 * sample_res) ** 0.5
    weight = jax.random.uniform(k_w, (freq_res, 1, sample_res),
                                minval=-bound, maxval=bound, dtype=jnp.float32)
    bias = jax.random.uniform(k_b, (freq_res,),
                              minval=-bound, maxval=bound, dtype=jnp.float32)

    out = adaptive_encoder_1d(signal, weight, bias,
                              freq_res=freq_res, sample_res=sample_res)
    out = jax.block_until_ready(out)

    ref = _reference(signal, weight, bias, sample_res)
    assert out.shape == ref.shape, (out.shape, ref.shape)
    assert jnp.allclose(out, ref, atol=1e-4, rtol=1e-4), \
        float(jnp.max(jnp.abs(out - ref)))

    print("KERNEL_OK")
</pallas_src>

<mosaic_0001>
module attributes {stable_mosaic.version = 11 : i64} {
  func.func @_adaptive_encoder_kernel(%arg0: i32, %arg1: i32, %arg2: i32, %arg3: memref<1x4x128xf32, #tpu.memory_space<vmem>>, %arg4: memref<1x1x4x1xf32, #tpu.memory_space<vmem>>, %arg5: memref<2x32x4xf32, #tpu.memory_space<vmem>>, %arg6: memref<32x1xf32, #tpu.memory_space<vmem>>, %arg7: memref<1x32x128xf32, #tpu.memory_space<vmem>>) attributes {dimension_semantics = [#tpu.dimension_semantics<parallel>, #tpu.dimension_semantics<parallel>, #tpu.dimension_semantics<parallel>], iteration_bounds = array<i64: 2, 1, 1>, scalar_prefetch = 0 : i64, scratch_operands = 0 : i64, tpu.core_type = #tpu.core_type<tc>, window_params = [{transform_indices = @transform_0, window_bounds = array<i64: 1, 4, 128>}, {transform_indices = @transform_1, window_bounds = array<i64: 1, 1, 4, 1>}, {transform_indices = @transform_2, window_bounds = array<i64: 2, 32, 4>}, {transform_indices = @transform_3, window_bounds = array<i64: 32, 1>}, {transform_indices = @transform_4, window_bounds = array<i64: 1, 32, 128>}]} {
    %c0 = arith.constant 0 : index
    %c0_0 = arith.constant 0 : index
    %c0_1 = arith.constant 0 : index
    %0 = vector.load %arg3[%c0, %c0_0, %c0_1] : memref<1x4x128xf32, #tpu.memory_space<vmem>>, vector<1x4x128xf32>
    %1 = vector.shape_cast %0 : vector<1x4x128xf32> to vector<4x128xf32>
    %c0_2 = arith.constant 0 : index
    %c0_3 = arith.constant 0 : index
    %c0_4 = arith.constant 0 : index
    %c0_5 = arith.constant 0 : index
    %2 = vector.load %arg4[%c0_2, %c0_3, %c0_4, %c0_5] : memref<1x1x4x1xf32, #tpu.memory_space<vmem>>, vector<1x1x4x1xf32>
    %3 = vector.shape_cast %2 : vector<1x1x4x1xf32> to vector<4x1xf32>
    %c127_i32 = arith.constant 127 : i32
    %4 = tpu.dynamic_rotate %1 by %c127_i32 dim 1 : vector<4x128xf32>, i32 -> vector<4x128xf32>
    %5 = tpu.iota {dimensions = array<i32: 1>} : vector<1x128xi32>
    %c127_i32_6 = arith.constant 127 : i32
    %6 = vector.broadcast %c127_i32_6 : i32 to vector<1x128xi32>
    %7 = arith.cmpi eq, %5, %6 : vector<1x128xi32>
    %8 = vector.shape_cast %7 : vector<1x128xi1> to vector<1x128xi1>
    %9 = vector.broadcast %8 : vector<1x128xi1> to vector<4x128xi1>
    %10 = vector.shape_cast %3 : vector<4x1xf32> to vector<4x1xf32>
    %11 = vector.broadcast %10 : vector<4x1xf32> to vector<4x128xf32>
    %12 = arith.select %9, %11, %4 : vector<4x128xi1>, vector<4x128xf32>
    %c0_7 = arith.constant 0 : index
    %c0_8 = arith.constant 0 : index
    %c0_9 = arith.constant 0 : index
    %13 = vector.load %arg5[%c0_7, %c0_8, %c0_9] : memref<2x32x4xf32, #tpu.memory_space<vmem>>, vector<1x32x4xf32>
    %14 = vector.shape_cast %13 : vector<1x32x4xf32> to vector<32x4xf32>
    %cst = arith.constant dense<0.000000e+00> : vector<32x128xf32>
    %15 = tpu.matmul %14, %1, %cst {dimension_numbers = #tpu.dot_dimension_numbers<[1], [0], [0], [1], [0, 0, 1, 1], [], []>} : vector<32x4xf32>, vector<4x128xf32>, vector<32x128xf32> -> vector<32x128xf32>
    %c1 = arith.constant 1 : index
    %c0_10 = arith.constant 0 : index
    %c0_11 = arith.constant 0 : index
    %16 = vector.load %arg5[%c1, %c0_10, %c0_11] : memref<2x32x4xf32, #tpu.memory_space<vmem>>, vector<1x32x4xf32>
    %17 = vector.shape_cast %16 : vector<1x32x4xf32> to vector<32x4xf32>
    %cst_12 = arith.constant dense<0.000000e+00> : vector<32x128xf32>
    %18 = tpu.matmul %17, %12, %cst_12 {dimension_numbers = #tpu.dot_dimension_numbers<[1], [0], [0], [1], [0, 0, 1, 1], [], []>} : vector<32x4xf32>, vector<4x128xf32>, vector<32x128xf32> -> vector<32x128xf32>
    %19 = arith.addf %15, %18 : vector<32x128xf32>
    %c0_13 = arith.constant 0 : index
    %c0_14 = arith.constant 0 : index
    %20 = vector.load %arg6[%c0_13, %c0_14] : memref<32x1xf32, #tpu.memory_space<vmem>>, vector<32x1xf32>
    %21 = vector.broadcast %20 : vector<32x1xf32> to vector<32x128xf32>
    %22 = arith.addf %19, %21 : vector<32x128xf32>
    %cst_15 = arith.constant 0.000000e+00 : f32
    %23 = vector.broadcast %cst_15 : f32 to vector<32x128xf32>
    %24 = arith.maximumf %22, %23 : vector<32x128xf32>
    %c0_16 = arith.constant 0 : index
    %c0_17 = arith.constant 0 : index
    %c0_18 = arith.constant 0 : index
    %25 = vector.load %arg7[%c0_16, %c0_17, %c0_18] : memref<1x32x128xf32, #tpu.memory_space<vmem>>, vector<1x32x128xf32>
    %26 = vector.shape_cast %25 : vector<1x32x128xf32> to vector<32x128xf32>
    %27 = vector.shape_cast %24 : vector<32x128xf32> to vector<1x32x128xf32>
    tpu.vector_store %arg7[%c0_16, %c0_17, %c0_18], %27 {strides = array<i32>} : memref<1x32x128xf32, #tpu.memory_space<vmem>>, vector<1x32x128xf32>,
    return
  }
  func.func @transform_0(%arg0: i32, %arg1: i32, %arg2: i32) -> (i32, i32, i32) {
    %c0_i32 = arith.constant 0 : i32
    %c0_i32_0 = arith.constant 0 : i32
    return %arg0, %c0_i32, %arg2 : i32, i32, i32
  }
  func.func @transform_1(%arg0: i32, %arg1: i32, %arg2: i32) -> (i32, i32, i32, i32) {
    %c0_i32 = arith.constant 0 : i32
    %c0_i32_0 = arith.constant 0 : i32
    %c0_i32_1 = arith.constant 0 : i32
    return %arg0, %arg2, %c0_i32, %c0_i32_0 : i32, i32, i32, i32
  }
  func.func @transform_2(%arg0: i32, %arg1: i32, %arg2: i32) -> (i32, i32, i32) {
    %c0_i32 = arith.constant 0 : i32
    %c0_i32_0 = arith.constant 0 : i32
    %c0_i32_1 = arith.constant 0 : i32
    return %c0_i32, %arg1, %c0_i32_0 : i32, i32, i32
  }
  func.func @transform_3(%arg0: i32, %arg1: i32, %arg2: i32) -> (i32, i32) {
    %c0_i32 = arith.constant 0 : i32
    %c0_i32_0 = arith.constant 0 : i32
    return %arg1, %c0_i32 : i32, i32
  }
  func.func @transform_4(%arg0: i32, %arg1: i32, %arg2: i32) -> (i32, i32, i32) {
    %c0_i32 = arith.constant 0 : i32
    return %arg0, %arg1, %arg2 : i32, i32, i32
  }
}

</mosaic_0001>

<bundles_post_ra>
// kernel: adaptive_encoder_1d.1
= control target key start
LH: loop header
LB: loop body
LE: loop exit
PB: predicated region body
PF: predicated region fallthrough
CT: control target
= control target key end

     0   :  { %s857_s15 = smov 0   ;;  %s859_s16 = smov 0   ;;  %s945_s0 = inlined_call_operand.vmem [shape: f32[2,4,18], index: 0, kind: input, shape index: {}]   ;;  %s946_s1 = inlined_call_operand.vmem [shape: f32[2,1,4,1], index: 1, kind: input, shape index: {}]   ;;  %s947_s2 = inlined_call_operand.vmem [shape: f32[2,32,4], index: 2, kind: input, shape index: {}]   ;;  %s948_s3 = inlined_call_operand.vmem [shape: f32[32,1], index: 3, kind: input, shape index: {}]   ;;  %s949_s4 = inlined_call_operand.vmem [shape: f32[2,32,17], index: 4, kind: output, shape index: {}]  }
   0x1   :  { %s861_s17 = smov 0  }
   0x2 LB: > { %s33_s18 = sadd.s32 1, %s824_s16  ;;  %p726_p0 = scmp.ge.s32.totalorder %s828_s17, 1  ;;  %s828_s17 = sphi %s861_s17, %s14_s17   ;;  %s824_s16 = sphi %s859_s16, %s951_s16   ;;  %s820_s15 = sphi %s857_s15, %s950_s15  }
   0x3   : > { %p35_p1 = scmp.ge.s32.totalorder %s33_s18, 2  ;;  %p225_p2 = scmp.lt.s32.totalorder %s828_s17, 3 }
   0x5   : > { %s953_s18 = smov (%p35_p1, %s33_s18), 0  ;;  %p226_p3 = pnand %p726_p0, %p225_p2 }
   0x6   : > { %p277_p4 = scmp.lt.s32.totalorder (!%p226_p3), %s820_s15, 1  ;;  %v830_v0 = vmov (!%p226_p3), 0   ;;  %vm353_vm0 = vcmask (!%p226_p3), 1043456   ;;  %s831_s26 = smov (!%p226_p3), 127   ;;  %v331_v3 = vld [vmem:[%s947_s2] sm:$0xff] (!%p226_p3)  ;;  %vm340_vm1 = vcmask (!%p226_p3), 31744   ;;  %v320_v12 = vlaneseq (!%p226_p3) }
   0x7   : > { %229 = sbr.rel (%p226_p3) target bundleno = 377 (0x179), region = 36  ;;  %804 = vset.pattern.permute.xlu0 (!%p226_p3), %v830_v0  ;;  %805 = vset.pattern.permute.xlu1 (!%p226_p3), %v830_v0  ;;  %v544_v4 = vld [vmem:[%s948_s3 + $0x10] sm:$0xff] (!%p226_p3)  ;;  %v731_v5 = vld [vmem:[%s947_s2 + $0x20] sm:$0xff] (!%p226_p3)  ;;  %v332_v6 = vld [vmem:[%s947_s2 + $0x8] sm:$0xff] (!%p226_p3) }
   0x8   : > { %768 = vmatprep.mubr.msk.f32.mxu0 (!%p226_p3), %vm340_vm1, %v331_v3  ;;  %760 = vmatprep.mubr.msk.f32.mxu1 (!%p226_p3), %vm340_vm1, %v731_v5  ;;  %v333_v7 = vld [vmem:[%s947_s2 + $0x10] sm:$0xff] (!%p226_p3)  ;;  %v334_v8 = vld [vmem:[%s947_s2 + $0x18] sm:$0xff] (!%p226_p3)  ;;  %v542_v9 = vld [vmem:[%s948_s3] sm:$0xff] (!%p226_p3)  ;;  %v321_v13 = vand.u32 (!%p226_p3), 127, %v320_v12 }
   0x9   : > { %548 = vperm.xlu1 (!%p226_p3), %805, %v542_v9   ;;  %v543_v10 = vld [vmem:[%s948_s3 + $0x8] sm:$0xff] (!%p226_p3)  ;;  %v545_v11 = vld [vmem:[%s948_s3 + $0x18] sm:$0xff] (!%p226_p3)  ;;  %v733_v18 = vld [vmem:[%s947_s2 + $0x30] sm:$0xff] (!%p226_p3) }
   0xa   : > { %vm322_vm2 = vcmp.eq.s32.totalorder (!%p226_p3), %v321_v13, 127  ;;  %v732_v17 = vld [vmem:[%s947_s2 + $0x28] sm:$0xff] (!%p226_p3)  ;;  %v734_v19 = vld [vmem:[%s947_s2 + $0x38] sm:$0xff] (!%p226_p3) }
   0xd   : > { %553 = vperm.xlu1 (!%p226_p3), %805, %v543_v10  }
   0xe   : > { %s955_s15 = smov (!%p277_p4, %s820_s15), 1 }
   0xf   : > { %s727_s19 = sshll.u32 %s955_s15, 2  ;;  %s747_s29 = sshll.u32 %s955_s15, 5 }
  0x10   : > { %s290_s22 = scalar_lea.vmem %s946_s1, %s727_s19  ;;  %s283_s25 = scalar_lea.vmem %s945_s0, %s727_s19 }
  0x11   : > { %v317_v1 = vld [vmem:[%s290_s22] sm:$0xf]  ;;  %563 = vperm.xlu1 %805, %v545_v11   ;;  %s314_s6 = scalar_lea.vmem %s949_s4, %s747_s29 }
  0x12   : > { %327 = vperm.xlu0 %804, %v317_v1   ;;  %v316_v2 = vld [vmem:[%s283_s25] sm:$0xf] }
  0x13   : > { %766 = vmatprep.subr.msk.mxu0 %vm353_vm0, %v316_v2 }
  0x14   : > { %767 = vmatpush3.msk.msra.mxu0 %vm353_vm0, %v316_v2 }
  0x15   : > { %769 = vmatmul.mubr.msk.f32.vlgmr.msra.gmra.mrb[0].mxu0 %vm340_vm1, %v332_v6 }
  0x16   : > { %318 = vrot.lane.b32.xlu0 %v316_v2, %s831_s26  ;;  %771 = vmatprep.mubr.msk.f32.mxu0 %vm340_vm1, %v333_v7 }
  0x19   : > { %772 = vmatmul.mubr.msk.f32.gmra.mrb[2].mxu0 %vm340_vm1, %v334_v8 }
  0x1a   : > { %558 = vperm.xlu0 %804, %v544_v4  }
  0x88   : > { %v549_v24 = vpop.permute.xlu1 %548 }
  0x8c   : > { %v554_v25 = vpop.permute.xlu1 %553 }
  0x90   : > { %v564_v36 = vpop.permute.xlu1 %563 }
  0x91   : > { %v328_v14 = vpop.permute.xlu0 %327 }
  0x95   : > { %v319_v15 = vpop.permute.xlu0 %318 }
  0x96   : > { %v330_v16 = vsel %vm322_vm2, %v328_v14, %v319_v15 }
  0x97   : > { %758 = vmatprep.subr.msk.mxu1 %vm353_vm0, %v330_v16 }
  0x98   : > { %759 = vmatpush3.msk.msra.mxu1 %vm353_vm0, %v330_v16 }
  0x99   : > { %761 = vmatmul.mubr.msk.f32.vlgmr.msra.gmra.mrb[0].mxu1 %vm340_vm1, %v732_v17  ;;  %v559_v39 = vpop.permute.xlu0 %558 }
  0x9a   : > { %763 = vmatprep.mubr.msk.f32.mxu1 %vm340_vm1, %v733_v18 }
  0x9d   : > { %764 = vmatmul.mubr.msk.f32.gmra.mrb[2].mxu1 %vm340_vm1, %v734_v19 }
  0xe8   : > { %v770_v20 = vpop.f32.mrb[0].mxu0 }
  0xe9   : > { %v523_v21 = vpop.f32.mrb[1].mxu0 }
  0xec   : > { %v773_v22 = vpop.f32.mrb[2].mxu0 }
  0xed   : > { %v533_v23 = vpop.f32.mrb[3].mxu0 }
 0x16c   : > { %v762_v26 = vpop.f32.mrb[0].mxu1 }
 0x16d   : > { %v529_v27 = vadd.f32 %v770_v20, %v762_v26  ;;  %v423_v28 = vpop.f32.mrb[1].mxu1 }
 0x16e   : > { %v524_v29 = vadd.f32 %v523_v21, %v423_v28 }
 0x16f   : > { %v567_v30 = vadd.f32 %v554_v25, %v529_v27 }
 0x170   : > { %v566_v31 = vadd.f32 %v549_v24, %v524_v29  ;;  %v765_v32 = vpop.f32.mrb[2].mxu1 }
 0x171   : > { %v571_v33 = vmax.f32 %v567_v30, 0.0  ;;  %v539_v34 = vadd.f32 %v773_v22, %v765_v32  ;;  %v433_v35 = vpop.f32.mrb[3].mxu1 }
 0x172   : > { %v570_v37 = vmax.f32 %v566_v31, 0.0  ;;  %v534_v38 = vadd.f32 %v533_v23, %v433_v35 }
 0x173   : > { %575 = vst [vmem:[%s314_s6 + $0x8] sm:$0xff] %v571_v33  ;;  %v569_v40 = vadd.f32 %v564_v36, %v539_v34 }
 0x174   : > { %574 = vst [vmem:[%s314_s6] sm:$0xff] %v570_v37  ;;  %v568_v41 = vadd.f32 %v559_v39, %v534_v38 }
 0x175   : > { %v573_v42 = vmax.f32 %v569_v40, 0.0 }
 0x176   : > { %v572_v43 = vmax.f32 %v568_v41, 0.0 }
 0x177   : > { %577 = vst [vmem:[%s314_s6 + $0x18] sm:$0xff] %v573_v42 }
 0x178   : > { %576 = vst [vmem:[%s314_s6 + $0x10] sm:$0xff] %v572_v43 }
 0x179 PF: > { %s14_s17 = sadd.s32 1, %s828_s17   ;;  %s950_s15 = smov %s824_s16 }
 0x17a   : > { %p11_p5 = scmp.ge.s32.totalorder %s14_s17, 4   ;;  %s951_s16 = smov %s953_s18 }
 0x17c   :  { %13 = sbr.rel (!%p11_p5) target bundleno = 2 (0x2), region = 76 }

</bundles_post_ra>
